<compile_context>
chip_gen: v7x
topology: tpu7x:2x2x1
jax: 0.10.0
libtpu: 0.0.40
codegen_flags: <defaults>
</compile_context>

<pallas_src>
import jax
import jax.numpy as jnp
from jax import lax
from jax.experimental import pallas as pl
from jax.experimental.pallas import tpu as pltpu


def _make_graph_unit_kernel(S, N, wp_off, tL, L):
    """Build the kernel body; S, N, row offset, tile size and L are static."""
    needs_mask = (L % tL) != 0

    def kernel(x_ref, w_all_ref, b_aug_ref, w1_ref, b1_ref, w2_ref, b2_ref,
               out_ref, xproj_ref, acc_ref):
        # x_ref:     (1, C, tL)        current batch / L-tile of the input
        # w_all_ref: (wp_off+N, C)     rows [0:S]=conv_state W, row S zeros (ones via
        #                              bias), rows [wp_off:]=conv_proj W (8-aligned)
        # b_aug_ref: (S+1, 1)          [conv_state bias ; 1.0]
        # w1_ref:(N,N) b1_ref:(1,N) w2_ref:(S,S) b2_ref:(S,1)
        # out_ref:   (1, 2S, 1)        pooled output (written on last L-tile only)
        # xproj_ref: (1, N, tL)        softmaxed projection tile (written every step)
        # acc_ref:   (S+1, N) VMEM     rows [0:S] = sum_l xs*xp, row S = sum_l xp
        l_idx = pl.program_id(1)

        @pl.when(l_idx == 0)
        def _init():
            acc_ref[...] = jnp.zeros_like(acc_ref)

        x = x_ref[0]                                               # (C, tL)

        # Fused channel matmul: one MXU call for conv_state + conv_proj (+ ones row).
        sn = jnp.dot(w_all_ref[...], x,
                     preferred_element_type=jnp.float32)           # (wp_off+N, tL)
        xs_aug = sn[:S + 1] + b_aug_ref[...]                       # (S+1, tL); row S == 1
        logits = sn[wp_off:]                                       # (N, tL)

        # Softmax over the node axis (per lane); divide -> EUP reciprocal + multiply.
        m = jnp.max(logits, axis=0, keepdims=True)
        e = jnp.exp(logits - m)
        inv = pl.reciprocal(jnp.sum(e, axis=0, keepdims=True), approx=False)
        xp = e * inv                                               # (N, tL)

        # Stream the projection tile back (overhang lanes of the tail tile are clipped
        # by the pipeline on writeback).
        xproj_ref[0] = xp

        if needs_mask:
            lane = lax.broadcasted_iota(jnp.int32, (1, tL), 1)
            valid = (l_idx * tL + lane) < L
            xs_acc = jnp.where(valid, xs_aug, 0.0)
            xp_acc = jnp.where(valid, xp, 0.0)
        else:
            xs_acc, xp_acc = xs_aug, xp

        # gcu / denom accumulation: contract the shared L (lane) axis directly,
        # no transpose of xp.
        acc_ref[...] += lax.dot_general(
            xs_acc, xp_acc,
            dimension_numbers=(((1,), (1,)), ((), ())),
            preferred_element_type=jnp.float32)                    # (S+1, N)

        @pl.when(l_idx == pl.num_programs(1) - 1)
        def _finalize():
            acc = acc_ref[...]
            gcu = acc[:S]                                          # (S, N)
            denom = acc[S:S + 1]                                   # (1, N)
            gcu = gcu * pl.reciprocal(denom + 1e-6, approx=False)

            # GCN: conv1 mixes the node axis (contract w1's 2nd dim -> no .T),
            # residual + relu, conv2 mixes the state axis.
            h = lax.dot_general(
                gcu, w1_ref[...],
                dimension_numbers=(((1,), (1,)), ((), ())),
                preferred_element_type=jnp.float32) + b1_ref[...]   # (S, N)
            h = jnp.maximum(h + gcu, 0.0)
            g = jnp.dot(w2_ref[...], h,
                        preferred_element_type=jnp.float32) + b2_ref[...]  # (S, N)

            # Adaptive avg / max pool over the node axis; write as (S, 1) columns so
            # the lane-axis reductions land in the output without a relayout.
            out_ref[0, :S, :] = jnp.mean(g, axis=1, keepdims=True)
            out_ref[0, S:, :] = jnp.max(g, axis=1, keepdims=True)

    return kernel


def graph_unit_forward(x, params, *, max_tile=512):
    """x: (n, c, d, h, w) float32.  Returns (out (n, 2S), x_proj (n, N, d, h, w))."""
    ws, bs, wp, w1, b1, w2, b2 = params
    n, c, d, h, w = x.shape
    L = d * h * w
    S = ws.shape[0]
    N = wp.shape[0]
    x_flat = x.reshape(n, c, L)

    # Tile the flattened spatial axis: full extent if small, else a 128-aligned tile
    # capped at max_tile (tail tile masked inside the kernel).
    tL = L if L <= max_tile else max_tile
    num_l = pl.cdiv(L, tL)

    # Fuse conv_state / ones-row / conv_proj into one weight; conv_proj rows start at
    # a multiple of 8 sublanes so the in-kernel row slices stay aligned (cheap).
    wp_off = ((S + 1 + 7) // 8) * 8
    w_all = jnp.zeros((wp_off + N, c), dtype=jnp.float32)
    w_all = w_all.at[:S].set(ws.astype(jnp.float32))
    w_all = w_all.at[wp_off:].set(wp.astype(jnp.float32))
    b_aug = jnp.concatenate(
        [bs.reshape(S, 1).astype(jnp.float32), jnp.ones((1, 1), jnp.float32)], axis=0)

    kernel = _make_graph_unit_kernel(S, N, wp_off, tL, L)

    out3, xproj_flat = pl.pallas_call(
        kernel,
        out_shape=(
            jax.ShapeDtypeStruct((n, 2 * S, 1), jnp.float32),
            jax.ShapeDtypeStruct((n, N, L), jnp.float32),
        ),
        grid=(n, num_l),
        in_specs=[
            pl.BlockSpec((1, c, tL), lambda b, l: (b, 0, l)),
            pl.BlockSpec((wp_off + N, c), lambda b, l: (0, 0)),
            pl.BlockSpec((S + 1, 1), lambda b, l: (0, 0)),
            pl.BlockSpec((N, N), lambda b, l: (0, 0)),
            pl.BlockSpec((1, N), lambda b, l: (0, 0)),
            pl.BlockSpec((S, S), lambda b, l: (0, 0)),
            pl.BlockSpec((S, 1), lambda b, l: (0, 0)),
        ],
        out_specs=(
            pl.BlockSpec((1, 2 * S, 1), lambda b, l: (b, 0, 0)),
            pl.BlockSpec((1, N, tL), lambda b, l: (b, 0, l)),
        ),
        scratch_shapes=[pltpu.VMEM((S + 1, N), jnp.float32)],
        # Batch axis is 'parallel' (megacore / v7x dual-TC shards here); the L axis is
        # a reduction so it must stay 'arbitrary'.
        # TODO(synk): for n == 1 on v7x, split the L axis across the two TensorCores
        # with per-core partial accumulators instead of relying on the batch axis.
        compiler_params=pltpu.CompilerParams(
            dimension_semantics=("parallel", "arbitrary")),
    )(x_flat, w_all, b_aug, w1, b1, w2, b2)

    out = out3.reshape(n, 2 * S)
    x_proj = xproj_flat.reshape(n, N, d, h, w)
    return out, x_proj


def reference_forward(x, params):
    """Pure-JAX reference mirroring the PyTorch forward."""
    ws, bs, wp, w1, b1, w2, b2 = params
    n, c, d, h, w = x.shape
    L = d * h * w
    N = wp.shape[0]
    xf = x.reshape(n, c, L)
    xs = jnp.einsum('sc,ncl->nsl', ws, xf) + bs.reshape(1, -1, 1)
    logits = jnp.einsum('kc,ncl->nkl', wp, xf)
    xp = jax.nn.softmax(logits, axis=1)
    gcu = jnp.einsum('nsl,nkl->nsk', xs, xp)
    gcu = gcu / (xp.sum(-1)[:, None, :] + 1e-6)
    hh = jnp.einsum('nsi,ji->nsj', gcu, w1) + b1.reshape(1, 1, -1)
    hh = jnp.maximum(hh + gcu, 0.0)
    g = jnp.einsum('ts,nsk->ntk', w2, hh) + b2.reshape(1, -1, 1)
    out = jnp.concatenate([g.mean(-1), g.max(-1)], axis=1)
    return out, xp.reshape(n, N, d, h, w)


if __name__ == "__main__":
    # x is (n, c, d, h, w); L = d*h*w = 400 so the multi-tile + masked-tail path runs.
    n, c, d, h, w = 2, 8, 4, 10, 10
    num_nodes = 6
    num_s = c // 2

    key = jax.random.PRNGKey(0)
    keys = jax.random.split(key, 8)
    x = jax.random.normal(keys[0], (n, c, d, h, w), dtype=jnp.float32)

    # Parameter shapes from __init__ (1x1 conv kernels squeezed to 2-D matrices):
    #   conv_state: Conv3d(c, num_s, 1)            -> ws (num_s, c), bs (num_s, 1)
    #   conv_proj : Conv3d(c, num_n, 1, bias=False) -> wp (num_n, c)
    #   gcn.conv1 : Conv1d(num_n, num_n, 1)        -> w1 (num_n, num_n), b1 (1, num_n)
    #   gcn.conv2 : Conv1d(num_s, num_s, 1)        -> w2 (num_s, num_s), b2 (num_s, 1)
    ws = 0.1 * jax.random.normal(keys[1], (num_s, c), dtype=jnp.float32)
    bs = 0.1 * jax.random.normal(keys[2], (num_s, 1), dtype=jnp.float32)
    wp = 0.1 * jax.random.normal(keys[3], (num_nodes, c), dtype=jnp.float32)
    w1 = 0.1 * jax.random.normal(keys[4], (num_nodes, num_nodes), dtype=jnp.float32)
    b1 = 0.1 * jax.random.normal(keys[5], (1, num_nodes), dtype=jnp.float32)
    w2 = 0.1 * jax.random.normal(keys[6], (num_s, num_s), dtype=jnp.float32)
    b2 = 0.1 * jax.random.normal(keys[7], (num_s, 1), dtype=jnp.float32)
    params = (ws, bs, wp, w1, b1, w2, b2)

    ref_out, ref_xproj = reference_forward(x, params)

    # Exercise both the multi-tile (tL=128, masked tail) and single-tile (tL=L) paths.
    for max_tile in (128, 512):
        out, x_proj = graph_unit_forward(x, params, max_tile=max_tile)
        out, x_proj = jax.block_until_ready((out, x_proj))
        assert out.shape == (n, 2 * num_s)
        assert x_proj.shape == (n, num_nodes, d, h, w)
        assert jnp.allclose(out, ref_out, atol=1e-5, rtol=1e-5), \
            f"out mismatch (max_tile={max_tile})"
        assert jnp.allclose(x_proj, ref_xproj, atol=1e-5, rtol=1e-5), \
            f"x_proj mismatch (max_tile={max_tile})"

    print("KERNEL_OK")
</pallas_src>

<mosaic_0001>
module attributes {stable_mosaic.version = 11 : i64} {
  func.func @kernel(%arg0: i32, %arg1: i32, %arg2: memref<1x8x128xf32, #tpu.memory_space<vmem>>, %arg3: memref<14x8xf32, #tpu.memory_space<vmem>>, %arg4: memref<5x1xf32, #tpu.memory_space<vmem>>, %arg5: memref<6x6xf32, #tpu.memory_space<vmem>>, %arg6: memref<1x6xf32, #tpu.memory_space<vmem>>, %arg7: memref<4x4xf32, #tpu.memory_space<vmem>>, %arg8: memref<4x1xf32, #tpu.memory_space<vmem>>, %arg9: memref<1x8x1xf32, #tpu.memory_space<vmem>>, %arg10: memref<1x6x128xf32, #tpu.memory_space<vmem>>, %arg11: memref<5x6xf32, #tpu.memory_space<vmem>>) attributes {dimension_semantics = [#tpu.dimension_semantics<parallel>, #tpu.dimension_semantics<arbitrary>], iteration_bounds = array<i64: 2, 4>, scalar_prefetch = 0 : i64, scratch_operands = 1 : i64, tpu.core_type = #tpu.core_type<tc>, window_params = [{transform_indices = @transform_0, window_bounds = array<i64: 1, 8, 128>}, {pipeline_mode = #tpu.pipeline_mode<synchronous>, transform_indices = @transform_1, window_bounds = array<i64: 14, 8>}, {pipeline_mode = #tpu.pipeline_mode<synchronous>, transform_indices = @transform_2, window_bounds = array<i64: 5, 1>}, {pipeline_mode = #tpu.pipeline_mode<synchronous>, transform_indices = @transform_3, window_bounds = array<i64: 6, 6>}, {pipeline_mode = #tpu.pipeline_mode<synchronous>, transform_indices = @transform_4, window_bounds = array<i64: 1, 6>}, {pipeline_mode = #tpu.pipeline_mode<synchronous>, transform_indices = @transform_5, window_bounds = array<i64: 4, 4>}, {pipeline_mode = #tpu.pipeline_mode<synchronous>, transform_indices = @transform_6, window_bounds = array<i64: 4, 1>}, {transform_indices = @transform_7, window_bounds = array<i64: 1, 8, 1>}, {transform_indices = @transform_8, window_bounds = array<i64: 1, 6, 128>}]} {
    %c0_i32 = arith.constant 0 : i32
    %0 = arith.cmpi eq, %arg1, %c0_i32 : i32
    %1 = arith.extui %0 : i1 to i32
    %c0_i32_0 = arith.constant 0 : i32
    %2 = arith.cmpi ne, %1, %c0_i32_0 : i32
    scf.if %2 {
      %cst_20 = arith.constant 0.000000e+00 : f32
      %46 = vector.broadcast %cst_20 : f32 to vector<5x6xf32>
      %c0_21 = arith.constant 0 : index
      %c0_22 = arith.constant 0 : index
      %47 = vector.load %arg11[%c0_21, %c0_22] : memref<5x6xf32, #tpu.memory_space<vmem>>, vector<5x6xf32>
      tpu.vector_store %arg11[%c0_21, %c0_22], %46 {strides = array<i32>} : memref<5x6xf32, #tpu.memory_space<vmem>>, vector<5x6xf32>,
    } else {
    }
    %c0 = arith.constant 0 : index
    %c0_1 = arith.constant 0 : index
    %c0_2 = arith.constant 0 : index
    %3 = vector.load %arg2[%c0, %c0_1, %c0_2] : memref<1x8x128xf32, #tpu.memory_space<vmem>>, vector<1x8x128xf32>
    %4 = vector.shape_cast %3 : vector<1x8x128xf32> to vector<8x128xf32>
    %c0_3 = arith.constant 0 : index
    %c0_4 = arith.constant 0 : index
    %5 = vector.load %arg3[%c0_3, %c0_4] : memref<14x8xf32, #tpu.memory_space<vmem>>, vector<14x8xf32>
    %cst = arith.constant dense<0.000000e+00> : vector<14x128xf32>
    %6 = tpu.matmul %5, %4, %cst {dimension_numbers = #tpu.dot_dimension_numbers<[1], [0], [0], [1], [0, 0, 1, 1], [], []>} : vector<14x8xf32>, vector<8x128xf32>, vector<14x128xf32> -> vector<14x128xf32>
    %7 = vector.extract_strided_slice %6 {offsets = [0, 0], sizes = [5, 128], strides = [1, 1]} : vector<14x128xf32> to vector<5x128xf32>
    %c0_5 = arith.constant 0 : index
    %c0_6 = arith.constant 0 : index
    %8 = vector.load %arg4[%c0_5, %c0_6] : memref<5x1xf32, #tpu.memory_space<vmem>>, vector<5x1xf32>
    %9 = vector.broadcast %8 : vector<5x1xf32> to vector<5x128xf32>
    %10 = arith.addf %7, %9 : vector<5x128xf32>
    %11 = vector.extract_strided_slice %6 {offsets = [8, 0], sizes = [6, 128], strides = [1, 1]} : vector<14x128xf32> to vector<6x128xf32>
    %cst_7 = arith.constant dense<0xFF800000> : vector<128xf32>
    %12 = vector.multi_reduction <maximumf>, %11, %cst_7 [0] : vector<6x128xf32> to vector<128xf32>
    %13 = vector.shape_cast %12 : vector<128xf32> to vector<1x128xf32>
    %14 = vector.broadcast %13 : vector<1x128xf32> to vector<6x128xf32>
    %15 = arith.subf %11, %14 : vector<6x128xf32>
    %16 = math.exp %15 : vector<6x128xf32>
    %cst_8 = arith.constant dense<0.000000e+00> : vector<128xf32>
    %17 = vector.multi_reduction <add>, %16, %cst_8 [0] : vector<6x128xf32> to vector<128xf32>
    %18 = vector.shape_cast %17 : vector<128xf32> to vector<1x128xf32>
    %19 = tpu.reciprocal %18 : vector<1x128xf32> -> vector<1x128xf32>
    %20 = vector.broadcast %19 : vector<1x128xf32> to vector<6x128xf32>
    %21 = arith.mulf %16, %20 : vector<6x128xf32>
    %c0_9 = arith.constant 0 : index
    %c0_10 = arith.constant 0 : index
    %c0_11 = arith.constant 0 : index
    %22 = vector.load %arg10[%c0_9, %c0_10, %c0_11] : memref<1x6x128xf32, #tpu.memory_space<vmem>>, vector<1x6x128xf32>
    %23 = vector.shape_cast %22 : vector<1x6x128xf32> to vector<6x128xf32>
    %24 = vector.shape_cast %21 : vector<6x128xf32> to vector<1x6x128xf32>
    tpu.vector_store %arg10[%c0_9, %c0_10, %c0_11], %24 {strides = array<i32>} : memref<1x6x128xf32, #tpu.memory_space<vmem>>, vector<1x6x128xf32>,
    %25 = tpu.iota {dimensions = array<i32: 1>} : vector<1x128xi32>
    %c128_i32 = arith.constant 128 : i32
    %26 = arith.muli %arg1, %c128_i32 : i32
    %27 = vector.broadcast %26 : i32 to vector<1x128xi32>
    %28 = arith.addi %27, %25 : vector<1x128xi32>
    %c400_i32 = arith.constant 400 : i32
    %29 = vector.broadcast %c400_i32 : i32 to vector<1x128xi32>
    %30 = arith.cmpi slt, %28, %29 : vector<1x128xi32>
    %cst_12 = arith.constant 0.000000e+00 : f32
    %31 = vector.shape_cast %30 : vector<1x128xi1> to vector<1x128xi1>
    %32 = vector.broadcast %31 : vector<1x128xi1> to vector<5x128xi1>
    %33 = vector.broadcast %cst_12 : f32 to vector<5x128xf32>
    %34 = arith.select %32, %10, %33 : vector<5x128xi1>, vector<5x128xf32>
    %cst_13 = arith.constant 0.000000e+00 : f32
    %35 = vector.shape_cast %30 : vector<1x128xi1> to vector<1x128xi1>
    %36 = vector.broadcast %35 : vector<1x128xi1> to vector<6x128xi1>
    %37 = vector.broadcast %cst_13 : f32 to vector<6x128xf32>
    %38 = arith.select %36, %21, %37 : vector<6x128xi1>, vector<6x128xf32>
    %c0_14 = arith.constant 0 : index
    %c0_15 = arith.constant 0 : index
    %39 = vector.load %arg11[%c0_14, %c0_15] : memref<5x6xf32, #tpu.memory_space<vmem>>, vector<5x6xf32>
    %cst_16 = arith.constant dense<0.000000e+00> : vector<5x6xf32>
    %40 = tpu.matmul %34, %38, %cst_16 {dimension_numbers = #tpu.dot_dimension_numbers<[1], [1], [0], [0], [0, 0, 1, 0], [], []>} : vector<5x128xf32>, vector<6x128xf32>, vector<5x6xf32> -> vector<5x6xf32>
    %41 = arith.addf %39, %40 : vector<5x6xf32>
    %c0_17 = arith.constant 0 : index
    %c0_18 = arith.constant 0 : index
    %42 = vector.load %arg11[%c0_17, %c0_18] : memref<5x6xf32, #tpu.memory_space<vmem>>, vector<5x6xf32>
    tpu.vector_store %arg11[%c0_17, %c0_18], %41 {strides = array<i32>} : memref<5x6xf32, #tpu.memory_space<vmem>>, vector<5x6xf32>,
    %c3_i32 = arith.constant 3 : i32
    %43 = arith.cmpi eq, %arg1, %c3_i32 : i32
    %44 = arith.extui %43 : i1 to i32
    %c0_i32_19 = arith.constant 0 : i32
    %45 = arith.cmpi ne, %44, %c0_i32_19 : i32
    scf.if %45 {
      %c0_20 = arith.constant 0 : index
      %c0_21 = arith.constant 0 : index
      %46 = vector.load %arg11[%c0_20, %c0_21] : memref<5x6xf32, #tpu.memory_space<vmem>>, vector<5x6xf32>
      %47 = vector.extract_strided_slice %46 {offsets = [0, 0], sizes = [4, 6], strides = [1, 1]} : vector<5x6xf32> to vector<4x6xf32>
      %48 = vector.extract_strided_slice %46 {offsets = [4, 0], sizes = [1, 6], strides = [1, 1]} : vector<5x6xf32> to vector<1x6xf32>
      %cst_22 = arith.constant 9.99999997E-7 : f32
      %49 = vector.broadcast %cst_22 : f32 to vector<1x6xf32>
      %50 = arith.addf %48, %49 : vector<1x6xf32>
      %51 = tpu.reciprocal %50 : vector<1x6xf32> -> vector<1x6xf32>
      %52 = vector.broadcast %51 : vector<1x6xf32> to vector<4x6xf32>
      %53 = arith.mulf %47, %52 : vector<4x6xf32>
      %c0_23 = arith.constant 0 : index
      %c0_24 = arith.constant 0 : index
      %54 = vector.load %arg5[%c0_23, %c0_24] : memref<6x6xf32, #tpu.memory_space<vmem>>, vector<6x6xf32>
      %cst_25 = arith.constant dense<0.000000e+00> : vector<4x6xf32>
      %55 = tpu.matmul %53, %54, %cst_25 {dimension_numbers = #tpu.dot_dimension_numbers<[1], [1], [0], [0], [0, 0, 1, 0], [], []>} : vector<4x6xf32>, vector<6x6xf32>, vector<4x6xf32> -> vector<4x6xf32>
      %c0_26 = arith.constant 0 : index
      %c0_27 = arith.constant 0 : index
      %56 = vector.load %arg6[%c0_26, %c0_27] : memref<1x6xf32, #tpu.memory_space<vmem>>, vector<1x6xf32>
      %57 = vector.broadcast %56 : vector<1x6xf32> to vector<4x6xf32>
      %58 = arith.addf %55, %57 : vector<4x6xf32>
      %59 = arith.addf %58, %53 : vector<4x6xf32>
      %cst_28 = arith.constant 0.000000e+00 : f32
      %60 = vector.broadcast %cst_28 : f32 to vector<4x6xf32>
      %61 = arith.maximumf %59, %60 : vector<4x6xf32>
      %c0_29 = arith.constant 0 : index
      %c0_30 = arith.constant 0 : index
      %62 = vector.load %arg7[%c0_29, %c0_30] : memref<4x4xf32, #tpu.memory_space<vmem>>, vector<4x4xf32>
      %cst_31 = arith.constant dense<0.000000e+00> : vector<4x6xf32>
      %63 = tpu.matmul %62, %61, %cst_31 {dimension_numbers = #tpu.dot_dimension_numbers<[1], [0], [0], [1], [0, 0, 1, 1], [], []>} : vector<4x4xf32>, vector<4x6xf32>, vector<4x6xf32> -> vector<4x6xf32>
      %c0_32 = arith.constant 0 : index
      %c0_33 = arith.constant 0 : index
      %64 = vector.load %arg8[%c0_32, %c0_33] : memref<4x1xf32, #tpu.memory_space<vmem>>, vector<4x1xf32>
      %65 = vector.broadcast %64 : vector<4x1xf32> to vector<4x6xf32>
      %66 = arith.addf %63, %65 : vector<4x6xf32>
      %cst_34 = arith.constant dense<0.000000e+00> : vector<4xf32>
      %67 = vector.multi_reduction <add>, %66, %cst_34 [1] : vector<4x6xf32> to vector<4xf32>
      %68 = vector.shape_cast %67 : vector<4xf32> to vector<4x1xf32>
      %cst_35 = arith.constant 6.000000e+00 : f32
      %69 = vector.broadcast %cst_35 : f32 to vector<4x1xf32>
      %70 = arith.divf %68, %69 : vector<4x1xf32>
      %c0_36 = arith.constant 0 : index
      %c0_37 = arith.constant 0 : index
      %c0_38 = arith.constant 0 : index
      %71 = vector.load %arg9[%c0_36, %c0_37, %c0_38] : memref<1x8x1xf32, #tpu.memory_space<vmem>>, vector<1x4x1xf32>
      %72 = vector.shape_cast %71 : vector<1x4x1xf32> to vector<4x1xf32>
      %73 = vector.shape_cast %70 : vector<4x1xf32> to vector<1x4x1xf32>
      tpu.vector_store %arg9[%c0_36, %c0_37, %c0_38], %73 {strides = array<i32>} : memref<1x8x1xf32, #tpu.memory_space<vmem>>, vector<1x4x1xf32>,
      %cst_39 = arith.constant dense<0xFF800000> : vector<4xf32>
      %74 = vector.multi_reduction <maximumf>, %66, %cst_39 [1] : vector<4x6xf32> to vector<4xf32>
      %75 = vector.shape_cast %74 : vector<4xf32> to vector<4x1xf32>
      %c0_40 = arith.constant 0 : index
      %c4 = arith.constant 4 : index
      %c0_41 = arith.constant 0 : index
      %76 = vector.load %arg9[%c0_40, %c4, %c0_41] : memref<1x8x1xf32, #tpu.memory_space<vmem>>, vector<1x4x1xf32>
      %77 = vector.shape_cast %76 : vector<1x4x1xf32> to vector<4x1xf32>
      %78 = vector.shape_cast %75 : vector<4x1xf32> to vector<1x4x1xf32>
      tpu.vector_store %arg9[%c0_40, %c4, %c0_41], %78 {strides = array<i32>} : memref<1x8x1xf32, #tpu.memory_space<vmem>>, vector<1x4x1xf32>,
    } else {
    }
    return
  }
  func.func @transform_0(%arg0: i32, %arg1: i32) -> (i32, i32, i32) {
    %c0_i32 = arith.constant 0 : i32
    %c0_i32_0 = arith.constant 0 : i32
    return %arg0, %c0_i32, %arg1 : i32, i32, i32
  }
  func.func @transform_1(%arg0: i32, %arg1: i32) -> (i32, i32) {
    %c0_i32 = arith.constant 0 : i32
    %c0_i32_0 = arith.constant 0 : i32
    %c0_i32_1 = arith.constant 0 : i32
    return %c0_i32, %c0_i32_0 : i32, i32
  }
  func.func @transform_2(%arg0: i32, %arg1: i32) -> (i32, i32) {
    %c0_i32 = arith.constant 0 : i32
    %c0_i32_0 = arith.constant 0 : i32
    %c0_i32_1 = arith.constant 0 : i32
    return %c0_i32, %c0_i32_0 : i32, i32
  }
  func.func @transform_3(%arg0: i32, %arg1: i32) -> (i32, i32) {
    %c0_i32 = arith.constant 0 : i32
    %c0_i32_0 = arith.constant 0 : i32
    %c0_i32_1 = arith.constant 0 : i32
    return %c0_i32, %c0_i32_0 : i32, i32
  }
  func.func @transform_4(%arg0: i32, %arg1: i32) -> (i32, i32) {
    %c0_i32 = arith.constant 0 : i32
    %c0_i32_0 = arith.constant 0 : i32
    %c0_i32_1 = arith.constant 0 : i32
    return %c0_i32, %c0_i32_0 : i32, i32
  }
  func.func @transform_5(%arg0: i32, %arg1: i32) -> (i32, i32) {
    %c0_i32 = arith.constant 0 : i32
    %c0_i32_0 = arith.constant 0 : i32
    %c0_i32_1 = arith.constant 0 : i32
    return %c0_i32, %c0_i32_0 : i32, i32
  }
  func.func @transform_6(%arg0: i32, %arg1: i32) -> (i32, i32) {
    %c0_i32 = arith.constant 0 : i32
    %c0_i32_0 = arith.constant 0 : i32
    %c0_i32_1 = arith.constant 0 : i32
    return %c0_i32, %c0_i32_0 : i32, i32
  }
  func.func @transform_7(%arg0: i32, %arg1: i32) -> (i32, i32, i32) {
    %c0_i32 = arith.constant 0 : i32
    %c0_i32_0 = arith.constant 0 : i32
    %c0_i32_1 = arith.constant 0 : i32
    return %arg0, %c0_i32, %c0_i32_0 : i32, i32, i32
  }
  func.func @transform_8(%arg0: i32, %arg1: i32) -> (i32, i32, i32) {
    %c0_i32 = arith.constant 0 : i32
    %c0_i32_0 = arith.constant 0 : i32
    return %arg0, %c0_i32, %arg1 : i32, i32, i32
  }
}

</mosaic_0001>

<bundles_post_ra>
// kernel: tpu_custom_call.1
= control target key start
LH: loop header
LB: loop body
LE: loop exit
PB: predicated region body
PF: predicated region fallthrough
CT: control target
= control target key end

     0   :  { %s1362_s0 = inlined_call_operand.hbm [shape: f32[2,8,400], index: 0, kind: input, shape index: {}]   ;;  %s1363_s1 = inlined_call_operand.vmem [shape: f32[14,8], index: 1, kind: input, shape index: {}]   ;;  %s1364_s2 = inlined_call_operand.vmem [shape: f32[5,1], index: 2, kind: input, shape index: {}]   ;;  %s1365_s3 = inlined_call_operand.vmem [shape: f32[6,6], index: 3, kind: input, shape index: {}]   ;;  %s1366_s4 = inlined_call_operand.vmem [shape: f32[1,6], index: 4, kind: input, shape index: {}]   ;;  %s1367_s5 = inlined_call_operand.vmem [shape: f32[4,4], index: 5, kind: input, shape index: {}]   ;;  %s1368_s6 = inlined_call_operand.vmem [shape: f32[4,1], index: 6, kind: input, shape index: {}]   ;;  %s1369_s7 = inlined_call_operand.vmem [shape: f32[2,8,1], index: 7, kind: output, shape index: {0}]   ;;  %s1370_s8 = inlined_call_operand.vmem [shape: f32[2,6,400], index: 8, kind: output, shape index: {1}]  }
   0x1   :  { %1372 = sst [smem:[#allocation7_spill]] %s1366_s4 }
   0x2   :  { %1373 = sst [smem:[#allocation8_spill]] %s1367_s5 }
   0x3   :  { %1374 = sst [smem:[#allocation9_spill]] %s1368_s6 }
   0x4   :  { %14 = vsyncpa [#allocation4], 0 }
   0x5   :  { %16 = vsyncpa [#allocation4 + $0x1], 0  ;;  %s1174_s27 = smov 0   ;;  %s1176_s28 = smov 0  }
   0x6   :  { %s1178_s29 = smov 0   ;;  %s1180_s30 = smov 0  }
   0x7   :  { %s1182_s9 = smov 0   ;;  %s1184_s10 = smov 0  }
   0x8   :  { %s1186_s11 = smov 0   ;;  %s1188_s12 = smov 0  }
   0x9 LB: > { %s882_s13 = sadd.s32 4294967295, %s1119_s12   ;;  %s31_s14 = sadd.s32 1, %s1111_s10  ;;  %s1119_s12 = sphi %s1188_s12, %s22_s12   ;;  %s1115_s11 = sphi %s1186_s11, %s1391_s11   ;;  %s1111_s10 = sphi %s1184_s10, %s1390_s10   ;;  %s1107_s9 = sphi %s1182_s9, %s1389_s9   ;;  %s1103_s30 = sphi %s1180_s30, %s1388_s30   ;;  %s1099_s29 = sphi %s1178_s29, %s1387_s29   ;;  %s1095_s28 = sphi %s1176_s28, %s1386_s28   ;;  %s1091_s27 = sphi %s1174_s27, %s1385_s27  }
   0xa   : > { %p32_p0 = scmp.ge.s32.totalorder %s31_s14, 4  ;;  %s34_s15 = sadd.s32 1, %s1115_s11 }
   0xb   : > { %s43_s16 = sadd.s32 1, %s1099_s29  ;;  %p50_p1 = scmp.ne.s32.totalorder %s1099_s29, %s1095_s28 }
   0xc   : > { %s1393_s14 = smov (%p32_p0, %s31_s14), 0  ;;  %s1395_s15 = smov (!%p32_p0, %s34_s15), %s1115_s11 }
   0xd   : > { %1375 = sst [smem:[#allocation6_spill]] %s1393_s14  ;;  %s39_s17 = ssub.s32 %s1111_s10, %s1393_s14 }
   0xe   : > { %p51_p2 = scmp.eq.s32.totalorder %s1119_s12, 0  ;;  %p36_p3 = scmp.ge.s32.totalorder %s1395_s15, 2 }
   0xf   : > { %p56_p4 = scmp.ne.s32.totalorder %s1095_s28, %s1091_s27  ;;  %p57_p6 = scmp.eq.s32.totalorder %s882_s13, 0 }
  0x10   : > { %p1225_p5 = por %p51_p2, %p50_p1  ;;  %s1397_s15 = smov (%p36_p3, %s1395_s15), 0 }
  0x11   : > { %p1231_p7 = por %p57_p6, %p56_p4  ;;  %s38_s20 = ssub.s32 %s1115_s11, %s1397_s15 }
  0x12   : > { %p943_p8 = scmp.lt.s32.totalorder %s1119_s12, 8  ;;  %s40_s21 = sor.u32 %s39_s17, %s38_s20 }
  0x13   : > { %s278_s22 = sand.u32 1, %s1099_s29   ;;  %p41_p9 = scmp.eq.s32.totalorder %s40_s21, 0 }
  0x14   : > { %s886_s23 = sshll.u32 %s278_s22, 3  ;;  %s887_s24 = sshll.u32 %s1115_s11, 2 }
  0x15   : > { %s1241_s25 = scalar_select %p41_p9, %s1099_s29, %s43_s16  }
  0x16   : > { %s287_s26 = sadd.s32 %s1111_s10, %s887_s24  ;;  %s282_s13 = scalar_lea.vmem [#allocation3], %s886_s23 }
  0x17   : > { %s888_s27 = sshll.u32 %s287_s26, 7  ;;  %s291_s14 = sshll.u32 %s282_s13, 4  ;;  %s1249_s14 = int_to_ptr.vmem [resolvable:$true] %s291_s14 }
  0x18   : > { %s1247_s6 = scalar_lea.hbm %s1362_s0, %s888_s27  ;;  %p1255_p10 = pnand %p943_p8, %p1225_p5 }
  0x19   : > { %s279_s17 = scalar_lea.sflag [#allocation4], %s278_s22  ;;  %s1023_s4 = scalar_lea.hbm %s1247_s6, 128 }
  0x1a   : > { %p1024_p13 = scmp.ne.s32.totalorder %s1247_s6, %s1023_s4  ;;  %p1025_p0 = pneg %p1255_p10 }
  0x1b   : > { %s1028_s20 = scalar_lea.hbm %s1362_s0, 1024  ;;  %p1029_p3 = scmp.lt.u32.totalorder %s1247_s6, %s1362_s0 }
  0x1c   : > { %p1026_p1 = pnand %p1025_p0, %p1024_p13  ;;  %p1030_p4 = scmp.lt.u32.totalorder %s1028_s20, %s1023_s4 }
  0x1d   : > { %p1032_p6 = scmp.lt.u32.totalorder %s1023_s4, %s1247_s6 }
  0x1e   : > { %p1027_p2 = pneg %p1026_p1  ;;  %p1031_p5 = por %p1030_p4, %p1029_p3 }
  0x20   : > { %p1033_p8 = por %p1032_p6, %p1031_p5 }
  0x22   : > { %p1034_p9 = pnand %p1033_p8, %p1027_p2 }
  0x24   : > { %1037 = shalt.err (!%p1034_p9)
}
  0x25   : > { %s1038_s22 = scalar_lea.vmem %s1249_s14, 128  ;;  %s1121_s24 = smov [#allocation3]  }
  0x26   : > { %p1039_p13 = scmp.ne.s32.totalorder %s1249_s14, %s1038_s22  ;;  %s1043_s26 = sshll.u32 %s1121_s24, 4  ;;  %s1044_s26 = int_to_ptr.vmem [resolvable:$false] %s1043_s26 }
  0x27   : > { %s1045_s27 = scalar_lea.vmem %s1044_s26, 256  ;;  %p1046_p12 = scmp.lt.s32.totalorder %s1249_s14, %s1044_s26 }
  0x28   : > { %p1041_p1 = pnand %p1039_p13, %p1025_p0  ;;  %p1047_p3 = scmp.lt.s32.totalorder %s1045_s27, %s1038_s22 }
  0x2a   : > { %p1042_p11 = pneg %p1041_p1  ;;  %p1048_p4 = por %p1047_p3, %p1046_p12 }
  0x2c   : > { %p1049_p5 = pnand %p1048_p4, %p1042_p11 }
  0x2e   : > { %1052 = shalt.err (!%p1049_p5)
}
  0x2f   : > { %942 = dma.hbm_to_vmem [thread:$0]  (!%p1255_p10), %s1247_s6, 128, %s1249_s14, %s279_s17  }
  0x30   : > { %p1379_p2 = scmp.lt.s32.totalorder %s1119_s12, 9  ;;  %p1380_p6 = scmp.ge.s32.totalorder %s1119_s12, 1 }
  0x32   : > { %p297_p0 = pnand %p1380_p6, %p1379_p2 }
  0x33   : > { %s302_s13 = sand.u32 (!%p297_p0), 1, %s1095_s28  }
  0x34   : > { %300 = sbr.rel (%p297_p0) target bundleno = 1163 (0x48b), region = 48  ;;  %s890_s4 = sshll.u32 (!%p297_p0), %s302_s13, 3 }
  0x35   : > { %s303_s5 = scalar_lea.sflag (!%p297_p0), [#allocation4], %s302_s13  ;;  %s306_s18 = scalar_lea.vmem (!%p297_p0), [#allocation3], %s890_s4 }
  0x3b   : > { %1086 = dma.done.wait (%p1231_p7), %s303_s5, 128  }
  0x3c   : > { %1088 = vsyncadd (%p1231_p7), %s303_s5, 4294967168  ;;  %p346_p10 = scmp.lt.s32.totalorder %s1107_s9, 1  ;;  %p352_p11 = scmp.lt.s32.totalorder %s1103_s30, 3 }
  0x3d   : > { %p894_p7 = scmp.ne.s32.totalorder %s1103_s30, 0 }
  0x3e   : > { %s1399_s9 = smov (!%p346_p10, %s1107_s9), 1  ;;  %vm362_vm0 = vcmask (!%p894_p7), 45056   ;;  %v1122_v0 = vmov (!%p894_p7), 0.0  }
  0x3f   : > { %s353_s6 = scalar_select %p352_p11, %s1103_s30, 3 }
  0x40   : > { %s891_s14 = sshll.u32 %s1399_s9, 3  ;;  %s892_s16 = sshll.u32 %s1399_s9, 2  ;;  %363 = vst.msk [vmem:[#allocation2] sm:$0x1f] (!%p894_p7), %vm362_vm0, %v1122_v0 }
  0x41   : > { %s1302_s21 = scalar_lea.vmem %s1369_s7, %s891_s14  ;;  %s355_s23 = sadd.s32 %s892_s16, %s353_s6 }
  0x42   : > { %s893_s22 = sshll.u32 %s355_s23, 3  ;;  %361 = sbr.rel (%p894_p7) target bundleno = 73 (0x49), region = 56 }
  0x43   : > { %s1307_s26 = scalar_lea.vmem %s1370_s8, %s893_s22 }
  0x49 PF: > { %v364_v1 = vld [vmem:[%s306_s18] sm:$0xff]  ;;  %v365_v2 = vld [vmem:[%s1363_s1] sm:$0xff]  ;;  %vm367_vm1 = vcmask 64512   ;;  %v1123_v5 = vmov 0   ;;  %v1124_v6 = vmov 0.0   ;;  %vm1125_vm2 = vmmov 0  }
  0x4a   : > { %v366_v3 = vld [vmem:[%s1363_s1 + $0x8] sm:$0x3f]  ;;  %917 = vmatprep.subr.mxu0 %v364_v1  ;;  %919 = vmatprep.mubr.msk.f32.mxu0 %vm367_vm1, %v365_v2  ;;  %v449_v4 = vld [vmem:[%s1364_s2] sm:$0x1f]  ;;  %vm456_vm3 = vcmask 1045504   ;;  %v477_v26 = vlaneseq  ;;  %s897_s18 = sshll.u32 %s1103_s30, 7 }
  0x4b   : > { %918 = vmatpush3.msra.mxu0 %v364_v1  ;;  %1015 = vset.pattern.permute.xlu0 %v1123_v5  ;;  %v480_v28 = vstv %s897_s18  ;;  %v487_v34 = vld [vmem:[#allocation2] sm:$0x1f]  ;;  %vm559_vm5 = vcmask 45056   ;;  %p900_p12 = scmp.ne.s32.totalorder %s1103_s30, 3 }
  0x4c   : > { %920 = vmatmul.mubr.msk.f32.vlgmr.msra.gmra.mrb[0].mxu0 %vm367_vm1, %v366_v3  ;;  %452 = vperm.xlu0 %1015, %v449_v4   ;;  %v478_v27 = vand.u32 127, %v477_v26  ;;  %v573_v38 = vld [vmem:[%s1365_s3] sm:$0x3f] (!%p900_p12)  ;;  %vm581_vm6 = vcmask (!%p900_p12), 48128   ;;  %v1126_v39 = vmov (!%p900_p12), 0.0   ;;  %vm1127_vm7 = vmmov (!%p900_p12), 0  }
  0x4d   : > { %922 = vmatprep.subr.mxu1 %v1124_v6  ;;  %924 = vmatprep.mubr.msk.f32.mxu1 %vm1125_vm2, %v1124_v6  ;;  %v569_v42 = vshrl.u32 (!%p900_p12), %v477_v26, 7  ;;  %s1381_s20 = sld [smem:[#allocation9_spill]] (!%p900_p12)  ;;  %v1128_v48 = vmov (!%p900_p12), 0   ;;  %s1382_s24 = sld [smem:[#allocation7_spill]] (!%p900_p12)  ;;  %vm671_vm8 = vcmask (!%p900_p12), 1043456   ;;  %vm667_vm9 = vcmask (!%p900_p12), 31744  }
  0x4e   : > { %v481_v29 = vadd.s32 %v480_v28, %v478_v27  ;;  %927 = vmatprep.subr.mxu0 (!%p900_p12), %v1126_v39  ;;  %929 = vmatprep.mubr.msk.f32.mxu0 (!%p900_p12), %vm1127_vm7, %v1126_v39  ;;  %s1383_s9 = sld [smem:[#allocation8_spill]] (!%p900_p12)  ;;  %vm745_vm10 = vcmask (!%p900_p12), 44032   ;;  %vm751_vm11 = vcmask (!%p900_p12), 3072  }
  0x4f   : > { %v570_v43 = vsub.s32 (!%p900_p12), 4, %v569_v42 }
  0x50   : > { %vm482_vm4 = vcmp.lt.s32.totalorder %v481_v29, 400  ;;  %1020 = vset.pattern.permute.xlu0 (!%p900_p12), %v1128_v48 }
  0x52   : > { %928 = vmatpush3.xpose.msk.msra.mxu0 (!%p900_p12), %vm581_vm6, %v573_v38 }
  0x53   : > { %v661_v47 = vld [vmem:[%s1381_s20] sm:$0xf] (!%p900_p12) }
  0x54   : > { %664 = vperm.xlu0 (!%p900_p12), %1020, %v661_v47   ;;  %v901_v49 = vld [vmem:[%s1382_s24] ss:$0 sm:$0xff] (!%p900_p12) }
  0x55   : > { %v660_v55 = vld [vmem:[%s1383_s9] sm:$0xf] (!%p900_p12) }
  0xcb   : > { %v453_v31 = vpop.permute.xlu0 %452 }
  0xd3   : > { %v665_v56 = vpop.permute.xlu0 (!%p900_p12), %664 }
 0x11f   : > { %v921_v7 = vpop.f32.mrb[0].mxu0 }
 0x120   : > { %v457_v8 = vsel %vm456_vm3, %v921_v7, -inf  ;;  %v440_v9 = vpop.f32.mrb[1].mxu0 }
 0x121   : > { %v458_v10 = vrot.slane %v457_v8, 4  ;;  %v455_v33 = vadd.f32 %v453_v31, %v440_v9 }
 0x123   : > { %v459_v11 = vmax.f32 %v457_v8, %v458_v10 }
 0x125   : > { %v460_v12 = vrot.slane %v459_v11, 2 }
 0x127   : > { %v461_v13 = vmax.f32 %v459_v11, %v460_v12 }
 0x129   : > { %v462_v14 = vrot.slane %v461_v13, 1 }
 0x12b   : > { %v463_v15 = vmax.f32 %v461_v13, %v462_v14 }
 0x12d   : > { %v464_v16 = vsub.f32 %v921_v7, %v463_v15 }
 0x12f   : > { %v465_v17 = vmul.f32 1.442695, %v464_v16 }
 0x131   : > { %1016 = vpow2.f32 %v465_v17 }
 0x13b   : > { %v1017_v18 = vpop.eup %1016 }
 0x13c   : > { %v467_v19 = vsel %vm456_vm3, %v1017_v18, 0.0 }
 0x13d   : > { %v468_v20 = vrot.slane %v467_v19, 4 }
 0x13f   : > { %v469_v21 = vadd.f32 %v468_v20, %v467_v19 }
 0x141   : > { %v470_v22 = vrot.slane %v469_v21, 2 }
 0x143   : > { %v471_v23 = vadd.f32 %v470_v22, %v469_v21 }
 0x145   : > { %v472_v24 = vrot.slane %v471_v23, 1 }
 0x147   : > { %v473_v25 = vadd.f32 %v472_v24, %v471_v23 }
 0x149   : > { %1018 = vrcp.f32 %v473_v25 }
 0x153   : > { %v1019_v30 = vpop.eup %1018 }
 0x154   : > { %v475_v32 = vmul.f32 %v1019_v30, %v1017_v18 }
 0x156   : > { %476 = vst [vmem:[%s1307_s26] sm:$0x3f] %v475_v32  ;;  %923 = vmatpush3.xpose.msk.msra.mxu1 %vm482_vm4, %v475_v32 }
 0x157   : > { %932 = vmatprep.subr.mxu1 (!%p900_p12), %v1126_v39 }
 0x159   : > { %925 = vmatmul.mubr.msk.f32.vlgmr.msra.gmra.mrb[0].mxu1 %vm482_vm4, %v455_v33 }
 0x15a   : > { %934 = vmatprep.mubr.msk.f32.mxu1 (!%p900_p12), %vm1127_vm7, %v1126_v39 }
 0x229   : > { %564 = sbr.rel (%p900_p12) target bundleno = 1163 (0x48b), region = 60 }
 0x22c   : > { %v554_v35 = vpop.f32.mrb[0].mxu1 }
 0x22d   : > { %v558_v36 = vadd.f32 %v554_v35, %v487_v34  ;;  %v926_v37 = vpop.f32.mrb[1].mxu1 }
 0x22f   : > { %560 = vst.msk [vmem:[#allocation2] sm:$0x1f] %vm559_vm5, %v558_v36 }
 0x236   : > { %v565_v40 = vld [vmem:[#allocation2] sm:$0x1f] }
 0x237   : > { %v566_v41 = vadd.f32 1e-06, %v565_v40 }
 0x239   : > { %1021 = vrcp.f32 %v566_v41 }
 0x243   : > { %v1022_v44 = vpop.eup %1021 }
 0x244   : > { %v571_v45 = vrot.slane %v1022_v44, %v570_v43 }
 0x246   : > { %v572_v46 = vmul.f32 %v571_v45, %v565_v40 }
 0x248   : > { %930 = vmatmul.mubr.msk.f32.vlgmr.msra.gmra.mrb[0].mxu0 %vm581_vm6, %v572_v46 }
 0x31b   : > { %v654_v50 = vpop.f32.mrb[0].mxu0 }
 0x31c   : > { %v655_v51 = vadd.f32 %v901_v49, %v654_v50  ;;  %v931_v52 = vpop.f32.mrb[1].mxu0 }
 0x31e   : > { %v658_v53 = vadd.f32 %v655_v51, %v572_v46 }
 0x320   : > { %v659_v54 = vmax.f32 %v658_v53, 0.0 }
 0x322   : > { %933 = vmatpush3.msk.msra.mxu1 %vm671_vm8, %v659_v54 }
 0x323   : > { %935 = vmatmul.mubr.msk.f32.vlgmr.msra.gmra.mrb[0].mxu1 %vm667_vm9, %v660_v55 }
 0x3f6   : > { %v741_v57 = vpop.f32.mrb[0].mxu1 }
 0x3f7   : > { %v742_v58 = vadd.f32 %v741_v57, %v665_v56  ;;  %v936_v59 = vpop.f32.mrb[1].mxu1 }
 0x3f9   : > { %v753_v60 = vsel %vm745_vm10, %v742_v58, -inf  ;;  %v746_v61 = vsel %vm745_vm10, %v742_v58, 0.0 }
 0x3fa   : > { %754 = vmax.xlane.f32.xlu1 %v753_v60  ;;  %747 = vadd.xlane.f32.xlu0 %v746_v61 }
 0x487   : > { %v755_v62 = vpop.xlane.xlu1 %754  ;;  %v748_v63 = vpop.xlane.xlu0 %747 }
 0x488   : > { %756 = vst.msk [vmem:[%s1302_s21 + $0x4] sm:$0xf] %vm751_vm11, %v755_v62  ;;  %v750_v0 = vmul.f32 0.16666667, %v748_v63 }
 0x48a   : > { %752 = vst.msk [vmem:[%s1302_s21] sm:$0xf] %vm751_vm11, %v750_v0 }
 0x48b PF: > { %s22_s12 = sadd.s32 1, %s1119_s12   ;;  %s1384_s13 = sld [smem:[#allocation6_spill]] }
 0x48c   : > { %p19_p8 = scmp.ge.s32.totalorder %s22_s12, 10   ;;  %s1385_s27 = smov %s1095_s28 }
 0x48d   : > { %s1386_s28 = smov %s1099_s29  ;;  %s1387_s29 = smov %s1241_s25 }
 0x48e   : > { %s1388_s30 = smov %s1111_s10  ;;  %s1389_s9 = smov %s1115_s11 }
 0x48f   : > { %s1391_s11 = smov %s1397_s15  ;;  %21 = sbr.rel (!%p19_p8) target bundleno = 9 (0x9), region = 108 }
 0x491   : > { %s1390_s10 = smov %s1384_s13 }
 0x496   :  { %798 = vsyncpa [#allocation4], 1 }
 0x497   :  { %800 = vsyncpa [#allocation4 + $0x1], 1 }

</bundles_post_ra>
